<compile_context>
chip_gen: v5e
topology: v5e:2x2
jax: 0.10.0
libtpu: 0.0.40
codegen_flags: <defaults>
</compile_context>

<pallas_src>
import functools
import math

import jax
import jax.numpy as jnp
import numpy as np
from jax import lax
from jax.experimental import pallas as pl
from jax.experimental.pallas import tpu as pltpu


_VMEM_TILE_BUDGET = 40 * 1024 * 1024   # per-step VMEM budget used for tile sizing
_VMEM_LIMIT_BYTES = 48 * 1024 * 1024   # scoped VMEM cap (safe on v5e/v6e/v7x)
_MAX_LANES = 32 * 1024                 # lane-width target ceiling (~8K-32K sweet spot)
_MIN_SPLIT_LANES = 512                 # don't split into >=2 grid steps below this


def _round_up(x, m):
    return (x + m - 1) // m * m


# ------------------------------- kernel body ---------------------------------
def _causal_conv1d_kernel(x_ref, w_ref, b_ref, o_ref, *, shifts, L):
    # x_ref: (Cin_p, W) activations; W = B_TILE * L, block boundaries align
    #        with batch segments (W is a multiple of L).
    # w_ref: (K_eff, Cout_p, Cin_p) per-tap weights (degenerate taps dropped).
    # b_ref: (Cout_p, 1) float32 bias column.
    # o_ref: (Cout_p, W) lane-dense output block.
    xb = x_ref[...]
    Cin_p, W = xb.shape
    lane_aligned = (W % 128 == 0)          # static (block shape)

    # Time index within each length-L batch segment; hoisted once per grid
    # step and reused by every tap's causal mask.
    t_in_seq = lax.broadcasted_iota(jnp.int32, (Cin_p, W), 1) % L

    acc = None
    for idx, s in enumerate(shifts):
        if s == 0:
            tap = xb
        else:
            if lane_aligned:
                # XLU lane rotation (otherwise idle slot).  Cross-segment /
                # wrap-around bleed is killed by the causal mask below.
                rolled = pltpu.roll(xb, shift=s, axis=1)
            else:
                # tiny / unaligned fallback tile: plain slice+concat roll
                rolled = jnp.concatenate([xb[:, W - s:], xb[:, :W - s]], axis=1)
            # first s lanes of every batch segment are the causal zero padding
            tap = jnp.where(t_in_seq >= s, rolled, 0).astype(xb.dtype)
        part = jnp.dot(w_ref[idx], tap, preferred_element_type=jnp.float32)
        acc = part if acc is None else acc + part

    o_ref[...] = (acc + b_ref[...]).astype(o_ref.dtype)


# ----------------------------- tile selection ---------------------------------
def _bytes_per_lane(Cin_p, Cout_p, in_itemsize, out_itemsize):
    return (2 * Cin_p * in_itemsize      # input block, double-buffered
            + 2 * Cout_p * out_itemsize  # output block, double-buffered
            + 2 * Cin_p * in_itemsize    # rolled + masked tap temporaries
            + Cin_p * 4                  # int32 per-segment time index
            + Cout_p * 4)                # float32 accumulator


def _pick_batch_tile(N, L, bytes_per_lane):
    """Pick B_TILE so W = B_TILE*L is 128-aligned and fits the VMEM budget,
    minimizing batch padding, and preferring >= 2 grid steps (v7x: 2 TCs)
    when the per-step tile stays >= _MIN_SPLIT_LANES lanes.
    Returns None when no 128-aligned tile exists (tiny/odd shapes)."""
    g = 128 // math.gcd(L, 128)          # smallest B_TILE with (B_TILE*L) % 128 == 0
    max_w = min(_MAX_LANES, max(_VMEM_TILE_BUDGET // bytes_per_lane, 1))
    cands = [bt for bt in range(g, N + 1, g) if bt * L <= max_w]
    if not cands:
        return None
    # minimize padded batch first
    min_np = min(_round_up(N, bt) for bt in cands)
    cands = [bt for bt in cands if _round_up(N, bt) == min_np]
    bt = max(cands)
    if min_np // bt < 2:
        for smaller in reversed(cands):
            if smaller * L >= _MIN_SPLIT_LANES and min_np // smaller >= 2:
                bt = smaller
                break
    return bt


# ------------------------------ weight prep -----------------------------------
def _prepare_taps(weight, bias, dilation, L, Cin_p, Cout_p, compute_dtype):
    """Pad channels to sublane minimums, drop degenerate taps (shift >= L) and
    return per-tap weight matrices (K_eff, Cout_p, Cin_p), bias column and the
    static tuple of causal shifts."""
    Cout, Cin, K = weight.shape
    wp = jnp.pad(weight, ((0, Cout_p - Cout), (0, Cin_p - Cin), (0, 0)))
    shifts, mats = [], []
    for k in range(K):
        s = (K - 1 - k) * dilation
        if s >= L:            # this tap only ever sees the causal zero padding
            continue
        shifts.append(s)
        mats.append(wp[:, :, k])
    w_taps = jnp.stack(mats, axis=0).astype(compute_dtype)   # (K_eff, Cout_p, Cin_p)
    b_col = jnp.pad(bias, (0, Cout_p - bias.shape[0])) \
               .reshape(Cout_p, 1).astype(jnp.float32)
    return w_taps, b_col, tuple(shifts)


# --------------------------- folded-layout entry -------------------------------
def causal_conv1d_folded(xf, w_taps, b_col, shifts, *, L, B_TILE, out_dtype):
    """Causal conv on already-folded activations.

    xf: (Cin_p, N_p * L) in compute dtype -- channels on sublanes, (batch, time)
    folded onto lanes.  Rows >= Cin and batch segments >= N may hold garbage
    (their weights are zero / their outputs are cropped).  A stacked TCN should
    keep activations in this layout across layers to avoid per-layer
    transpose/cast HBM round trips.  Returns (Cout_p, N_p * L) in out_dtype.
    """
    Cin_p, total = xf.shape
    K_eff, Cout_p, _ = w_taps.shape
    assert total % L == 0
    N_p = total // L
    if B_TILE is None:
        B_TILE = N_p                      # single full-dim block (tiny shapes)
    assert N_p % B_TILE == 0
    W = B_TILE * L
    grid = (N_p // B_TILE,)

    kernel = functools.partial(_causal_conv1d_kernel, shifts=shifts, L=L)
    return pl.pallas_call(
        kernel,
        out_shape=jax.ShapeDtypeStruct((Cout_p, total), out_dtype),
        grid_spec=pltpu.PrefetchScalarGridSpec(
            num_scalar_prefetch=0,
            grid=grid,
            in_specs=[
                pl.BlockSpec((Cin_p, W), lambda n: (0, n)),
                pl.BlockSpec((K_eff, Cout_p, Cin_p), lambda n: (0, 0, 0)),
                pl.BlockSpec((Cout_p, 1), lambda n: (0, 0)),
            ],
            out_specs=pl.BlockSpec((Cout_p, W), lambda n: (0, n)),
        ),
        compiler_params=pltpu.CompilerParams(
            dimension_semantics=("parallel",),
            vmem_limit_bytes=_VMEM_LIMIT_BYTES,
        ),
    )(xf, w_taps, b_col)


# ----------------------- PyTorch-interface wrapper -----------------------------
def causal_conv1d(x, weight, bias, *, dilation,
                  compute_dtype=jnp.bfloat16, out_dtype=None):
    """x: (N, Cin, L); weight: (Cout, Cin, K); bias: (Cout,) -> (N, Cout, L)."""
    N, Cin, L = x.shape
    Cout, _, K = weight.shape
    if out_dtype is None:
        out_dtype = x.dtype

    sub = 16 if compute_dtype == jnp.bfloat16 else 8
    Cin_p = _round_up(Cin, sub)            # sublane minimum only -- no MXU padding
    Cout_p = _round_up(Cout, 8)

    in_b = jnp.dtype(compute_dtype).itemsize
    out_b = jnp.dtype(out_dtype).itemsize
    bpl = _bytes_per_lane(Cin_p, Cout_p, in_b, out_b)

    B_TILE = _pick_batch_tile(N, L, bpl)
    N_p = N if B_TILE is None else _round_up(N, B_TILE)

    # Layout plumbing, done ONCE per call.  A stacked TCN should instead stay
    # in the folded layout and call causal_conv1d_folded directly.
    xp = jnp.pad(x, ((0, N_p - N), (0, Cin_p - Cin), (0, 0)))
    xf = xp.transpose(1, 0, 2).reshape(Cin_p, N_p * L).astype(compute_dtype)

    w_taps, b_col, shifts = _prepare_taps(weight, bias, dilation, L,
                                          Cin_p, Cout_p, compute_dtype)

    of = causal_conv1d_folded(xf, w_taps, b_col, shifts,
                              L=L, B_TILE=B_TILE, out_dtype=out_dtype)

    out = of.reshape(Cout_p, N_p, L).transpose(1, 0, 2)[:N, :Cout, :]
    return out.astype(out_dtype)


# ---------------------------- pure-JAX reference -------------------------------
def causal_conv1d_ref(x, weight, bias, dilation):
    K = weight.shape[-1]
    pad = (K - 1) * dilation
    y = lax.conv_general_dilated(
        x, weight, window_strides=(1,), padding=[(pad, 0)],
        rhs_dilation=(dilation,), dimension_numbers=('NCH', 'OIH', 'NCH'))
    return y + bias[None, :, None]


if __name__ == "__main__":
    key = jax.random.PRNGKey(0)

    # Case 1: spec-scale tiny shapes (kernel_size=3) -> unaligned full-block
    #         fallback path (concat roll).
    # Case 2: 128-aligned lane tiles, 2 parallel grid steps, pltpu.roll path.
    cases = [
        dict(N=2, Cin=4, Cout=8, L=16, K=3, dilation=2),
        dict(N=64, Cin=4, Cout=8, L=16, K=3, dilation=2),
    ]
    for c in cases:
        kx, kw, kb, key = jax.random.split(key, 4)
        x = jax.random.normal(kx, (c["N"], c["Cin"], c["L"]), jnp.float32)
        w = 0.01 * jax.random.normal(kw, (c["Cout"], c["Cin"], c["K"]), jnp.float32)
        b = 0.01 * jax.random.normal(kb, (c["Cout"],), jnp.float32)

        out = jax.block_until_ready(causal_conv1d(x, w, b, dilation=c["dilation"]))
        ref = causal_conv1d_ref(x, w, b, c["dilation"])
        # bf16 MXU operands (f32 accumulation) -> loosened tolerance vs f32 ref
        np.testing.assert_allclose(np.asarray(out), np.asarray(ref),
                                   rtol=2e-2, atol=1e-3)
    print("KERNEL_OK")
</pallas_src>

<mosaic_0001>
module attributes {stable_mosaic.version = 11 : i64} {
  func.func @_causal_conv1d_kernel(%arg0: i32, %arg1: memref<16x32xbf16, #tpu.memory_space<vmem>>, %arg2: memref<3x8x16xbf16, #tpu.memory_space<vmem>>, %arg3: memref<8x1xf32, #tpu.memory_space<vmem>>, %arg4: memref<8x32xf32, #tpu.memory_space<vmem>>) attributes {dimension_semantics = [#tpu.dimension_semantics<parallel>], iteration_bounds = array<i64: 1>, scalar_prefetch = 0 : i64, scratch_operands = 0 : i64, tpu.core_type = #tpu.core_type<tc>, window_params = [{transform_indices = @transform_0, window_bounds = array<i64: 16, 32>}, {pipeline_mode = #tpu.pipeline_mode<synchronous>, transform_indices = @transform_1, window_bounds = array<i64: 3, 8, 16>}, {pipeline_mode = #tpu.pipeline_mode<synchronous>, transform_indices = @transform_2, window_bounds = array<i64: 8, 1>}, {transform_indices = @transform_3, window_bounds = array<i64: 8, 32>}]} {
    %c0 = arith.constant 0 : index
    %c0_0 = arith.constant 0 : index
    %0 = vector.load %arg1[%c0, %c0_0] : memref<16x32xbf16, #tpu.memory_space<vmem>>, vector<16x32xbf16>
    %1 = tpu.iota {dimensions = array<i32: 1>} : vector<16x32xi32>
    %c16_i32 = arith.constant 16 : i32
    %c0_i32 = arith.constant 0 : i32
    %2 = arith.cmpi eq, %c16_i32, %c0_i32 : i32
    %c1_i32 = arith.constant 1 : i32
    %3 = arith.select %2, %c1_i32, %c16_i32 : i32
    %4 = vector.broadcast %3 : i32 to vector<16x32xi32>
    %5 = arith.remsi %1, %4 : vector<16x32xi32>
    %c0_i32_1 = arith.constant 0 : i32
    %6 = vector.broadcast %c0_i32_1 : i32 to vector<16x32xi32>
    %7 = arith.cmpi ne, %5, %6 : vector<16x32xi32>
    %c0_i32_2 = arith.constant 0 : i32
    %8 = vector.broadcast %c0_i32_2 : i32 to vector<16x32xi32>
    %9 = arith.cmpi slt, %5, %8 : vector<16x32xi32>
    %c0_i32_3 = arith.constant 0 : i32
    %10 = arith.cmpi slt, %3, %c0_i32_3 : i32
    %11 = vector.broadcast %10 : i1 to vector<16x32xi1>
    %12 = vector.broadcast %11 : vector<16x32xi1> to vector<16x32xi1>
    %13 = arith.xori %9, %12 : vector<16x32xi1>
    %14 = arith.andi %13, %7 : vector<16x32xi1>
    %15 = vector.broadcast %3 : i32 to vector<16x32xi32>
    %16 = arith.addi %5, %15 : vector<16x32xi32>
    %17 = arith.select %14, %16, %5 : vector<16x32xi1>, vector<16x32xi32>
    %18 = vector.extract_strided_slice %0 {offsets = [0, 28], sizes = [16, 4], strides = [1, 1]} : vector<16x32xbf16> to vector<16x4xbf16>
    %19 = vector.extract_strided_slice %0 {offsets = [0, 0], sizes = [16, 28], strides = [1, 1]} : vector<16x32xbf16> to vector<16x28xbf16>
    %20 = tpu.concatenate %18, %19 in 1 : vector<16x4xbf16>, vector<16x28xbf16> -> vector<16x32xbf16>
    %c4_i32 = arith.constant 4 : i32
    %21 = vector.broadcast %c4_i32 : i32 to vector<16x32xi32>
    %22 = arith.cmpi sge, %17, %21 : vector<16x32xi32>
    %c0_i32_4 = arith.constant 0 : i32
    %23 = arith.sitofp %c0_i32_4 : i32 to bf16
    %24 = vector.broadcast %23 : bf16 to vector<16x32xbf16>
    %25 = arith.select %22, %20, %24 : vector<16x32xi1>, vector<16x32xbf16>
    %c0_5 = arith.constant 0 : index
    %c0_6 = arith.constant 0 : index
    %c0_7 = arith.constant 0 : index
    %26 = vector.load %arg2[%c0_5, %c0_6, %c0_7] : memref<3x8x16xbf16, #tpu.memory_space<vmem>>, vector<1x8x16xbf16>
    %27 = vector.shape_cast %26 : vector<1x8x16xbf16> to vector<8x16xbf16>
    %cst = arith.constant dense<0.000000e+00> : vector<8x32xf32>
    %28 = tpu.matmul %27, %25, %cst {dimension_numbers = #tpu.dot_dimension_numbers<[1], [0], [0], [1], [0, 0, 1, 1], [], []>} : vector<8x16xbf16>, vector<16x32xbf16>, vector<8x32xf32> -> vector<8x32xf32>
    %29 = vector.extract_strided_slice %0 {offsets = [0, 30], sizes = [16, 2], strides = [1, 1]} : vector<16x32xbf16> to vector<16x2xbf16>
    %30 = vector.extract_strided_slice %0 {offsets = [0, 0], sizes = [16, 30], strides = [1, 1]} : vector<16x32xbf16> to vector<16x30xbf16>
    %31 = tpu.concatenate %29, %30 in 1 : vector<16x2xbf16>, vector<16x30xbf16> -> vector<16x32xbf16>
    %c2_i32 = arith.constant 2 : i32
    %32 = vector.broadcast %c2_i32 : i32 to vector<16x32xi32>
    %33 = arith.cmpi sge, %17, %32 : vector<16x32xi32>
    %c0_i32_8 = arith.constant 0 : i32
    %34 = arith.sitofp %c0_i32_8 : i32 to bf16
    %35 = vector.broadcast %34 : bf16 to vector<16x32xbf16>
    %36 = arith.select %33, %31, %35 : vector<16x32xi1>, vector<16x32xbf16>
    %c1 = arith.constant 1 : index
    %c0_9 = arith.constant 0 : index
    %c0_10 = arith.constant 0 : index
    %37 = vector.load %arg2[%c1, %c0_9, %c0_10] : memref<3x8x16xbf16, #tpu.memory_space<vmem>>, vector<1x8x16xbf16>
    %38 = vector.shape_cast %37 : vector<1x8x16xbf16> to vector<8x16xbf16>
    %cst_11 = arith.constant dense<0.000000e+00> : vector<8x32xf32>
    %39 = tpu.matmul %38, %36, %cst_11 {dimension_numbers = #tpu.dot_dimension_numbers<[1], [0], [0], [1], [0, 0, 1, 1], [], []>} : vector<8x16xbf16>, vector<16x32xbf16>, vector<8x32xf32> -> vector<8x32xf32>
    %40 = arith.addf %28, %39 : vector<8x32xf32>
    %c2 = arith.constant 2 : index
    %c0_12 = arith.constant 0 : index
    %c0_13 = arith.constant 0 : index
    %41 = vector.load %arg2[%c2, %c0_12, %c0_13] : memref<3x8x16xbf16, #tpu.memory_space<vmem>>, vector<1x8x16xbf16>
    %42 = vector.shape_cast %41 : vector<1x8x16xbf16> to vector<8x16xbf16>
    %cst_14 = arith.constant dense<0.000000e+00> : vector<8x32xf32>
    %43 = tpu.matmul %42, %0, %cst_14 {dimension_numbers = #tpu.dot_dimension_numbers<[1], [0], [0], [1], [0, 0, 1, 1], [], []>} : vector<8x16xbf16>, vector<16x32xbf16>, vector<8x32xf32> -> vector<8x32xf32>
    %44 = arith.addf %40, %43 : vector<8x32xf32>
    %c0_15 = arith.constant 0 : index
    %c0_16 = arith.constant 0 : index
    %45 = vector.load %arg3[%c0_15, %c0_16] : memref<8x1xf32, #tpu.memory_space<vmem>>, vector<8x1xf32>
    %46 = vector.broadcast %45 : vector<8x1xf32> to vector<8x32xf32>
    %47 = arith.addf %44, %46 : vector<8x32xf32>
    %c0_17 = arith.constant 0 : index
    %c0_18 = arith.constant 0 : index
    %48 = vector.load %arg4[%c0_17, %c0_18] : memref<8x32xf32, #tpu.memory_space<vmem>>, vector<8x32xf32>
    tpu.vector_store %arg4[%c0_17, %c0_18], %47 {strides = array<i32>} : memref<8x32xf32, #tpu.memory_space<vmem>>, vector<8x32xf32>,
    return
  }
  func.func @transform_0(%arg0: i32) -> (i32, i32) {
    %c0_i32 = arith.constant 0 : i32
    %c0_i32_0 = arith.constant 0 : i32
    return %c0_i32, %arg0 : i32, i32
  }
  func.func @transform_1(%arg0: i32) -> (i32, i32, i32) {
    %c0_i32 = arith.constant 0 : i32
    %c0_i32_0 = arith.constant 0 : i32
    %c0_i32_1 = arith.constant 0 : i32
    %c0_i32_2 = arith.constant 0 : i32
    return %c0_i32, %c0_i32_0, %c0_i32_1 : i32, i32, i32
  }
  func.func @transform_2(%arg0: i32) -> (i32, i32) {
    %c0_i32 = arith.constant 0 : i32
    %c0_i32_0 = arith.constant 0 : i32
    %c0_i32_1 = arith.constant 0 : i32
    return %c0_i32, %c0_i32_0 : i32, i32
  }
  func.func @transform_3(%arg0: i32) -> (i32, i32) {
    %c0_i32 = arith.constant 0 : i32
    %c0_i32_0 = arith.constant 0 : i32
    return %c0_i32, %arg0 : i32, i32
  }
}

</mosaic_0001>

<bundles_post_ra>
// kernel: tpu_custom_call.1
= control target key start
LH: loop header
LB: loop body
LE: loop exit
PB: predicated region body
PF: predicated region fallthrough
CT: control target
= control target key end

     0   :  { %8 = vsyncpa [#allocation3], 0  ;;  %s292_s0 = inlined_call_operand.vmem [shape: bf16[16,32], index: 0, kind: input, shape index: {}]   ;;  %s293_s1 = inlined_call_operand.hbm [shape: bf16[3,8,16], index: 1, kind: input, shape index: {}]   ;;  %s294_s2 = inlined_call_operand.vmem [shape: f32[8,1], index: 2, kind: input, shape index: {}]   ;;  %s295_s3 = inlined_call_operand.hbm [shape: f32[8,32], index: 3, kind: output, shape index: {}]  }
   0x1   :  { %9 = vsyncpa [#allocation4], 0  ;;  %s16_s14 = sshll.u32 %s293_s1, 4  ;;  %s249_s15 = smov [#allocation2]   ;;  %s17_s14 = int_to_ptr.hbm [resolvable:$true] %s16_s14 }
   0x2   :  { %s18_s16 = sshll.u32 %s249_s15, 4  ;;  %s250_s17 = smov 64   ;;  %s19_s16 = int_to_ptr.vmem [resolvable:$true] %s18_s16 }
   0x3   :  { %s251_s18 = smov 4  }
   0x4   :  { %24 = dma.hbm_to_vmem [thread:$0]  %s17_s14, 192, %s19_s16, [#allocation3], %s250_s17, %s250_s17, %s251_s18  }
   0x5   :  { %245 = dma.done.wait [#allocation3], 192  }
   0x6   :  { %246 = vsyncadd [#allocation3], 4294967104  ;;  %v186_v0 = vld [vmem:[%s292_s0] sm:$0xff]  ;;  %s252_s21 = smov 98   ;;  %s253_s22 = smov 100   ;;  %vm100_vm0 = vcmask 130048   ;;  %v36_v3 = vlaneseq }
   0x7   :  { %77 = vrot.lane.b32.xlu1 %v186_v0, %s252_s21  ;;  %55 = vrot.lane.b32.xlu0 %v186_v0, %s253_s22  ;;  %s254_s23 = smov 2   ;;  %v134_v1 = vld [vmem:[#allocation2 + $0x8] sm:$0xf]  ;;  %v255_v2 = vmov 0   ;;  %v153_v6 = vld [vmem:[%s294_s2] sm:$0xff]  ;;  %vm81_vm9 = vcmask 15360  }
   0x8   :  { %146 = vmatpush.bf16.msra.mxu2 %v186_v0  ;;  %195 = vset.pattern.permute.xlu2 %v255_v2  ;;  %v37_v4 = vand.u32 127, %v36_v3  ;;  %v70_v11 = vunpack.c.l.b16 %v255_v2  ;;  %v71_v12 = vunpack.c.h.b16 %v255_v2  ;;  %vm59_vm11 = vcmask 31744   ;;  %v99_v25 = vld [vmem:[#allocation2 + $0x4] sm:$0xf]  ;;  %v76_v26 = vld [vmem:[#allocation2] sm:$0xf] }
   0x9   :  { %196 = vset.pattern.permute.xlu0 %v255_v2  ;;  %156 = vperm.xlu2 %195, %v153_v6   ;;  %s256_s2 = smov [#allocation5]   ;;  %s169_s27 = sshll.u32 %s295_s3, 4  ;;  %vm160_vm13 = vcmask 261120   ;;  %s170_s27 = int_to_ptr.hbm [resolvable:$true] %s169_s27 }
   0xa   :  { %v42_v5 = vand.u32 15, %v37_v4  ;;  %s167_s24 = sshll.u32 %s256_s2, 4  ;;  %s168_s24 = int_to_ptr.vmem [resolvable:$true] %s167_s24 }
   0xb   :  { %185 = vmatmul.msk.bf16.vlgmr.msra.gmra.mxu2 %vm100_vm0, %v134_v1 }
   0xc   :  { %vm86_vm1 = vcmp.ge.s32.totalorder %v42_v5, 2  ;;  %vm64_vm2 = vcmp.ge.s32.totalorder %v42_v5, 4 }
   0xd   :  { %vm87_vm3 = vmpackc.low %vm86_vm1, %vm86_vm1 }
   0xe   :  { %vm65_vm4 = vmpackc.low %vm64_vm2, %vm64_vm2  ;;  %v88_v7 = vsel %vm87_vm3, 65537, %v255_v2 }
   0xf   :  { %79 = vrot.lane.b32.xlu1 %v186_v0, %s254_s23  ;;  %57 = vrot.lane.b32.xlu0 %v186_v0, %s251_s18  ;;  %v66_v8 = vsel %vm65_vm4, 65537, %v255_v2  ;;  %v89_v9 = vperm.slane %v88_v7, 0 }
  0x10   :  { %v67_v10 = vperm.slane %v66_v8, 0 }
  0x11   :  { %v90_v13 = vunpack.c.l.b16 %v89_v9  ;;  %v91_v14 = vunpack.c.h.b16 %v89_v9 }
  0x12   :  { %v68_v17 = vunpack.c.l.b16 %v67_v10  ;;  %v69_v18 = vunpack.c.h.b16 %v67_v10 }
  0x13   :  { %vm94_vm5 = vcmp.ne.s32.totalorder %v90_v13, %v70_v11  ;;  %vm95_vm6 = vcmp.ne.s32.totalorder %v91_v14, %v71_v12 }
  0x14   :  { %vm72_vm7 = vcmp.ne.s32.totalorder %v68_v17, %v70_v11  ;;  %vm73_vm8 = vcmp.ne.s32.totalorder %v69_v18, %v71_v12  ;;  %vm96_vm10 = vmpackc.low %vm95_vm6, %vm94_vm5 }
  0x15   :  { %vm74_vm12 = vmpackc.low %vm73_vm8, %vm72_vm7 }
  0x63   :  { %v157_v32 = vpop.permute.xlu2 %156 }
  0x79   :  { %v78_v15 = vpop.permute.xlu1 %77  ;;  %v56_v16 = vpop.permute.xlu0 %55 }
  0x81   :  { %v80_v19 = vpop.permute.xlu1 %79  ;;  %v58_v20 = vpop.permute.xlu0 %57 }
  0x82   :  { %v84_v21 = vsel %vm81_vm9, %v78_v15, %v80_v19  ;;  %v62_v22 = vsel %vm59_vm11, %v56_v16, %v58_v20 }
  0x83   :  { %v97_v23 = vsel %vm96_vm10, %v84_v21, 0  ;;  %v75_v24 = vsel %vm74_vm12, %v62_v22, 0 }
  0x84   :  { %111 = vmatpush.bf16.msra.mxu0 %v97_v23  ;;  %127 = vmatpush.bf16.msra.mxu1 %v75_v24 }
  0x87   :  { %183 = vmatmul.msk.bf16.vlgmr.msra.gmra.mxu0 %vm100_vm0, %v99_v25  ;;  %184 = vmatmul.msk.bf16.vlgmr.msra.gmra.mxu1 %vm100_vm0, %v76_v26 }
  0x8e   :  { %v148_v27 = vpop.f32.mrf.mxu2 }
  0x96   :  { %v150_v28 = vpop.f32.mrf.mxu2 }
 0x104   :  { %v113_v29 = vpop.f32.mrf.mxu0  ;;  %v129_v30 = vpop.f32.mrf.mxu1 }
 0x105   :  { %v130_v31 = vadd.f32 %v129_v30, %v113_v29 }
 0x107   :  { %v152_v33 = vadd.f32 %v148_v27, %v130_v31 }
 0x109   :  { %v159_v34 = vadd.f32 %v157_v32, %v152_v33 }
 0x10b   :  { %161 = vst.msk [vmem:[#allocation5] sm:$0xff] %vm160_vm13, %v159_v34 }
 0x10c   :  { %v115_v35 = vpop.f32.mrf.mxu0  ;;  %v131_v36 = vpop.f32.mrf.mxu1  ;;  %172 = dma.vmem_to_hbm [thread:$0]  %s168_s24, 128, %s170_s27, [#allocation4]  }
 0x10d   :  { %247 = dma.done.wait [#allocation4], 128  }
 0x10e   :  { %248 = vsyncadd [#allocation4], 4294967168 }
 0x10f   :  { %177 = vsyncpa [#allocation3], 1 }
 0x110   :  { %178 = vsyncpa [#allocation4], 1 }

</bundles_post_ra>
